<compile_context>
chip_gen: v7x
topology: tpu7x:2x2x1
jax: 0.10.0
libtpu: 0.0.40
codegen_flags: <defaults>
</compile_context>

<pallas_src>
import numpy as np
import jax
import jax.numpy as jnp
from jax.experimental import pallas as pl
from jax.experimental.pallas import tpu as pltpu


def _axial_rope_broadcast_kernel(xs_ref, xc_ref, ys_ref, yc_ref, out_ref):
    """Broadcast-add the tiny precomputed tables into one output block.

    xs_ref / xc_ref : (1, Xp, lane_w)      x-position sin/cos table (y-part lanes are 0)
    ys_ref / yc_ref : (tile_y, 1, lane_w)  y-position sin/cos table (x-part lanes are 0)
    out_ref         : (2, tile_y, Xp, lane_w)
    """
    out_ref[0] = xs_ref[...] + ys_ref[...]   # broadcasts to (tile_y, Xp, lane_w)
    out_ref[1] = xc_ref[...] + yc_ref[...]


def _pick_tile_y(Y, X, tile_y):
    if tile_y is not None:
        return tile_y
    if Y <= 8:
        return Y                                  # full-dim block, allowed
    target = max(1, 1024 // max(X, 1))            # ~1024 output rows per grid step
    t = max(8, (min(Y, target) // 8) * 8)         # multiple of 8
    return min(t, Y)


def axial_rotary_embedding(tensor, channels, max_freq=64, offset=0, tile_y=None):
    """JAX/Pallas equivalent of AxialRotaryEmbedding(channels, max_freq, offset)(tensor).

    tensor: (B, Y, X, C) -- only its (Y, X) shape is used, like the torch module.
    returns: (2, Y*X, 2*channels) float32
    """
    assert channels % 2 == 0, "rotary `channels` must be even"
    _, Y, X, _ = tensor.shape
    two_c = 2 * channels

    # ---- tiny table precompute (plain JAX glue; (X+Y)*channels/2 transcendentals) ----
    inv_freq = 1.0 / (max_freq ** (jnp.arange(0, channels, 2, dtype=jnp.float32) / channels))
    ang_x = jnp.arange(X, dtype=jnp.float32)[:, None] * inv_freq[None, :] - offset   # (X, D)
    ang_y = jnp.arange(Y, dtype=jnp.float32)[:, None] * inv_freq[None, :] - offset   # (Y, D)
    # interleaved repeat-each-2 -> (X, channels) / (Y, channels)
    sin_x = jnp.repeat(jnp.sin(ang_x), 2, axis=-1)
    cos_x = jnp.repeat(jnp.cos(ang_x), 2, axis=-1)
    sin_y = jnp.repeat(jnp.sin(ang_y), 2, axis=-1)
    cos_y = jnp.repeat(jnp.cos(ang_y), 2, axis=-1)

    # Lane-dense packing: fold `pack` consecutive output rows (same y, consecutive x)
    # into one 128-wide lane group so stores are unmasked full-lane writes.
    if two_c < 128 and 128 % two_c == 0 and X % (128 // two_c) == 0:
        pack = 128 // two_c
    else:
        pack = 1
    lane_w = pack * two_c
    Xp = X // pack

    zx = jnp.zeros((X, channels), jnp.float32)
    zy = jnp.zeros((Y, channels), jnp.float32)
    # Per output row: first `channels` cols from x, last `channels` cols from y.
    # x tables: fold `pack` consecutive x-rows into the lane dim.
    x_sin_tab = jnp.concatenate([sin_x, zx], axis=-1).reshape(1, Xp, lane_w)
    x_cos_tab = jnp.concatenate([cos_x, zx], axis=-1).reshape(1, Xp, lane_w)
    # y tables: same y-values for every packed sub-row -> tile along lanes.
    y_sin_tab = jnp.tile(jnp.concatenate([zy, sin_y], axis=-1), (1, pack)).reshape(Y, 1, lane_w)
    y_cos_tab = jnp.tile(jnp.concatenate([zy, cos_y], axis=-1), (1, pack)).reshape(Y, 1, lane_w)

    tile_y = _pick_tile_y(Y, X, tile_y)
    grid = (pl.cdiv(Y, tile_y),)

    out4 = pl.pallas_call(
        _axial_rope_broadcast_kernel,
        out_shape=jax.ShapeDtypeStruct((2, Y, Xp, lane_w), jnp.float32),
        grid=grid,
        in_specs=[
            pl.BlockSpec((1, Xp, lane_w), lambda i: (0, 0, 0)),
            pl.BlockSpec((1, Xp, lane_w), lambda i: (0, 0, 0)),
            pl.BlockSpec((tile_y, 1, lane_w), lambda i: (i, 0, 0)),
            pl.BlockSpec((tile_y, 1, lane_w), lambda i: (i, 0, 0)),
        ],
        out_specs=pl.BlockSpec((2, tile_y, Xp, lane_w), lambda i: (0, i, 0, 0)),
        compiler_params=pltpu.CompilerParams(dimension_semantics=("parallel",)),
    )(x_sin_tab, x_cos_tab, y_sin_tab, y_cos_tab)

    # Contiguous, metadata-only unpack back to the module's output layout.
    return out4.reshape(2, Y * X, two_c)


def _reference(tensor, channels, max_freq=64, offset=0):
    """Pure-JAX transcription of the PyTorch forward, for verification."""
    _, Y, X, _ = tensor.shape
    inv_freq = 1.0 / (max_freq ** (jnp.arange(0, channels, 2, dtype=jnp.float32) / channels))
    pos_x = jnp.arange(X, dtype=jnp.float32)
    pos_y = jnp.arange(Y, dtype=jnp.float32)
    sin_inp_x = pos_x[:, None] * inv_freq[None, :] - offset        # (X, D)
    sin_inp_y = pos_y[:, None] * inv_freq[None, :] - offset        # (Y, D)
    emb_x = jnp.stack([jnp.sin(sin_inp_x), jnp.cos(sin_inp_x)])    # (2, X, D)
    emb_y = jnp.stack([jnp.sin(sin_inp_y), jnp.cos(sin_inp_y)])    # (2, Y, D)
    D = emb_x.shape[-1]
    x_sinu = jnp.broadcast_to(emb_x[:, None, :, :], (2, Y, X, D))  # 's i d -> s j i d'
    y_sinu = jnp.broadcast_to(emb_y[:, :, None, :], (2, Y, X, D))  # 's j d -> s j i d'
    sin = jnp.concatenate([x_sinu[0], y_sinu[0]], axis=-1)         # (Y, X, channels)
    cos = jnp.concatenate([x_sinu[1], y_sinu[1]], axis=-1)
    sin = sin.reshape(Y * X, channels)                             # '(i j) d'
    cos = cos.reshape(Y * X, channels)
    sin = jnp.repeat(sin, 2, axis=-1)[None]                        # '() n (d j)', j=2
    cos = jnp.repeat(cos, 2, axis=-1)[None]
    return jnp.concatenate([sin, cos], axis=0)                     # (2, Y*X, 2*channels)


if __name__ == "__main__":
    key = jax.random.PRNGKey(0)
    configs = [
        # (B, Y, X, C_in, channels, tile_y_override)
        (2, 8, 8, 32, 32, None),   # pack=2 lane-dense output, grid of 1
        (1, 16, 16, 16, 8, 8),     # pack=8 lane-dense output, grid of 2 (multi-step pipeline)
    ]
    for (B, Y, X, Cin, channels, ty) in configs:
        key, sub = jax.random.split(key)
        tensor = jax.random.normal(sub, (B, Y, X, Cin), dtype=jnp.float32)
        out = jax.block_until_ready(
            axial_rotary_embedding(tensor, channels, max_freq=64, offset=0, tile_y=ty))
        ref = _reference(tensor, channels, max_freq=64, offset=0)
        assert out.shape == (2, Y * X, 2 * channels), out.shape
        np.testing.assert_allclose(np.asarray(out), np.asarray(ref), rtol=1e-5, atol=1e-5)
    print("KERNEL_OK")
</pallas_src>

<mosaic_0001>
module attributes {stable_mosaic.version = 11 : i64} {
  func.func @_axial_rope_broadcast_kernel(%arg0: i32, %arg1: memref<1x4x128xf32, #tpu.memory_space<vmem>>, %arg2: memref<1x4x128xf32, #tpu.memory_space<vmem>>, %arg3: memref<8x1x128xf32, #tpu.memory_space<vmem>>, %arg4: memref<8x1x128xf32, #tpu.memory_space<vmem>>, %arg5: memref<2x8x4x128xf32, #tpu.memory_space<vmem>>) attributes {dimension_semantics = [#tpu.dimension_semantics<parallel>], iteration_bounds = array<i64: 1>, scalar_prefetch = 0 : i64, scratch_operands = 0 : i64, tpu.core_type = #tpu.core_type<tc>, window_params = [{pipeline_mode = #tpu.pipeline_mode<synchronous>, transform_indices = @transform_0, window_bounds = array<i64: 1, 4, 128>}, {pipeline_mode = #tpu.pipeline_mode<synchronous>, transform_indices = @transform_1, window_bounds = array<i64: 1, 4, 128>}, {transform_indices = @transform_2, window_bounds = array<i64: 8, 1, 128>}, {transform_indices = @transform_3, window_bounds = array<i64: 8, 1, 128>}, {transform_indices = @transform_4, window_bounds = array<i64: 2, 8, 4, 128>}]} {
    %c0 = arith.constant 0 : index
    %c0_0 = arith.constant 0 : index
    %c0_1 = arith.constant 0 : index
    %0 = vector.load %arg1[%c0, %c0_0, %c0_1] : memref<1x4x128xf32, #tpu.memory_space<vmem>>, vector<1x4x128xf32>
    %c0_2 = arith.constant 0 : index
    %c0_3 = arith.constant 0 : index
    %c0_4 = arith.constant 0 : index
    %1 = vector.load %arg3[%c0_2, %c0_3, %c0_4] : memref<8x1x128xf32, #tpu.memory_space<vmem>>, vector<8x1x128xf32>
    %2 = vector.broadcast %0 : vector<1x4x128xf32> to vector<8x4x128xf32>
    %3 = vector.broadcast %1 : vector<8x1x128xf32> to vector<8x4x128xf32>
    %4 = arith.addf %2, %3 : vector<8x4x128xf32>
    %c0_5 = arith.constant 0 : index
    %c0_6 = arith.constant 0 : index
    %c0_7 = arith.constant 0 : index
    %c0_8 = arith.constant 0 : index
    %5 = vector.load %arg5[%c0_5, %c0_6, %c0_7, %c0_8] : memref<2x8x4x128xf32, #tpu.memory_space<vmem>>, vector<1x8x4x128xf32>
    %6 = vector.shape_cast %5 : vector<1x8x4x128xf32> to vector<8x4x128xf32>
    %7 = vector.shape_cast %4 : vector<8x4x128xf32> to vector<1x8x4x128xf32>
    tpu.vector_store %arg5[%c0_5, %c0_6, %c0_7, %c0_8], %7 {strides = array<i32>} : memref<2x8x4x128xf32, #tpu.memory_space<vmem>>, vector<1x8x4x128xf32>,
    %c0_9 = arith.constant 0 : index
    %c0_10 = arith.constant 0 : index
    %c0_11 = arith.constant 0 : index
    %8 = vector.load %arg2[%c0_9, %c0_10, %c0_11] : memref<1x4x128xf32, #tpu.memory_space<vmem>>, vector<1x4x128xf32>
    %c0_12 = arith.constant 0 : index
    %c0_13 = arith.constant 0 : index
    %c0_14 = arith.constant 0 : index
    %9 = vector.load %arg4[%c0_12, %c0_13, %c0_14] : memref<8x1x128xf32, #tpu.memory_space<vmem>>, vector<8x1x128xf32>
    %10 = vector.broadcast %8 : vector<1x4x128xf32> to vector<8x4x128xf32>
    %11 = vector.broadcast %9 : vector<8x1x128xf32> to vector<8x4x128xf32>
    %12 = arith.addf %10, %11 : vector<8x4x128xf32>
    %c1 = arith.constant 1 : index
    %c0_15 = arith.constant 0 : index
    %c0_16 = arith.constant 0 : index
    %c0_17 = arith.constant 0 : index
    %13 = vector.load %arg5[%c1, %c0_15, %c0_16, %c0_17] : memref<2x8x4x128xf32, #tpu.memory_space<vmem>>, vector<1x8x4x128xf32>
    %14 = vector.shape_cast %13 : vector<1x8x4x128xf32> to vector<8x4x128xf32>
    %15 = vector.shape_cast %12 : vector<8x4x128xf32> to vector<1x8x4x128xf32>
    tpu.vector_store %arg5[%c1, %c0_15, %c0_16, %c0_17], %15 {strides = array<i32>} : memref<2x8x4x128xf32, #tpu.memory_space<vmem>>, vector<1x8x4x128xf32>,
    return
  }
  func.func @transform_0(%arg0: i32) -> (i32, i32, i32) {
    %c0_i32 = arith.constant 0 : i32
    %c0_i32_0 = arith.constant 0 : i32
    %c0_i32_1 = arith.constant 0 : i32
    %c0_i32_2 = arith.constant 0 : i32
    return %c0_i32, %c0_i32_0, %c0_i32_1 : i32, i32, i32
  }
  func.func @transform_1(%arg0: i32) -> (i32, i32, i32) {
    %c0_i32 = arith.constant 0 : i32
    %c0_i32_0 = arith.constant 0 : i32
    %c0_i32_1 = arith.constant 0 : i32
    %c0_i32_2 = arith.constant 0 : i32
    return %c0_i32, %c0_i32_0, %c0_i32_1 : i32, i32, i32
  }
  func.func @transform_2(%arg0: i32) -> (i32, i32, i32) {
    %c0_i32 = arith.constant 0 : i32
    %c0_i32_0 = arith.constant 0 : i32
    %c0_i32_1 = arith.constant 0 : i32
    return %arg0, %c0_i32, %c0_i32_0 : i32, i32, i32
  }
  func.func @transform_3(%arg0: i32) -> (i32, i32, i32) {
    %c0_i32 = arith.constant 0 : i32
    %c0_i32_0 = arith.constant 0 : i32
    %c0_i32_1 = arith.constant 0 : i32
    return %arg0, %c0_i32, %c0_i32_0 : i32, i32, i32
  }
  func.func @transform_4(%arg0: i32) -> (i32, i32, i32, i32) {
    %c0_i32 = arith.constant 0 : i32
    %c0_i32_0 = arith.constant 0 : i32
    %c0_i32_1 = arith.constant 0 : i32
    %c0_i32_2 = arith.constant 0 : i32
    return %c0_i32, %arg0, %c0_i32_0, %c0_i32_1 : i32, i32, i32, i32
  }
}

</mosaic_0001>

<bundles_post_ra>
// kernel: tpu_custom_call.1
= control target key start
LH: loop header
LB: loop body
LE: loop exit
PB: predicated region body
PF: predicated region fallthrough
CT: control target
= control target key end

     0   :  { %9 = vsyncpa [#allocation3], 0  ;;  %s446_s0 = inlined_call_operand.hbm [shape: f32[1,4,128], index: 0, kind: input, shape index: {}]   ;;  %s447_s1 = inlined_call_operand.hbm [shape: f32[1,4,128], index: 1, kind: input, shape index: {}]   ;;  %s448_s2 = inlined_call_operand.hbm [shape: f32[8,1,128], index: 2, kind: input, shape index: {}]   ;;  %s449_s3 = inlined_call_operand.vmem [shape: f32[8,1,128], index: 3, kind: input, shape index: {}]   ;;  %s450_s4 = inlined_call_operand.hbm [shape: f32[2,8,4,128], index: 4, kind: output, shape index: {}]  }
   0x1   :  { %10 = vsyncpa [#allocation6], 0 }
   0x2   :  { %11 = vsyncpa [#allocation4], 0  ;;  %s338_s15 = smov [#allocation5]   ;;  %s339_s17 = smov [#allocation2]  }
   0x3   :  { %s28_s16 = sshll.u32 %s338_s15, 4  ;;  %s18_s18 = sshll.u32 %s339_s17, 4  ;;  %s29_s16 = int_to_ptr.vmem [resolvable:$true] %s28_s16  ;;  %s19_s18 = int_to_ptr.vmem [resolvable:$true] %s18_s18 }
   0x4   :  { %s244_s21 = scalar_lea.hbm %s447_s1, 64 }
   0x5   :  { %p245_p0 = scmp.ne.s32.totalorder %s447_s1, %s244_s21  ;;  %p248_p1 = scmp.lt.u32.totalorder %s244_s21, %s447_s1 }
   0x7   :  { %p250_p2 = pnand %p248_p1, %p245_p0 }
   0x9   :  { %253 = shalt.err (!%p250_p2)
}
   0xa   :  { %s254_s26 = scalar_lea.vmem %s29_s16, 64  ;;  %p259_p4 = scmp.lt.s32.totalorder %s29_s16, %s29_s16 }
   0xb   :  { %p255_p3 = scmp.ne.s32.totalorder %s29_s16, %s254_s26  ;;  %p260_p5 = scmp.lt.s32.totalorder %s254_s26, %s254_s26 }
   0xd   :  { %p261_p6 = por %p260_p5, %p259_p4 }
   0xf   :  { %p262_p7 = pnand %p261_p6, %p255_p3 }
  0x11   :  { %265 = shalt.err (!%p262_p7)
}
  0x12   :  { %31 = dma.hbm_to_vmem [thread:$0]  %s447_s1, 64, %s29_s16, [#allocation6]  }
  0x13   :  { %s266_s5 = scalar_lea.hbm %s446_s0, 64 }
  0x14   :  { %p267_p8 = scmp.ne.s32.totalorder %s446_s0, %s266_s5  ;;  %p270_p9 = scmp.lt.u32.totalorder %s266_s5, %s446_s0 }
  0x16   :  { %p272_p10 = pnand %p270_p9, %p267_p8 }
  0x18   :  { %275 = shalt.err (!%p272_p10)
}
  0x19   :  { %s276_s10 = scalar_lea.vmem %s19_s18, 64  ;;  %p281_p12 = scmp.lt.s32.totalorder %s19_s18, %s19_s18 }
  0x1a   :  { %p277_p11 = scmp.ne.s32.totalorder %s19_s18, %s276_s10  ;;  %p282_p13 = scmp.lt.s32.totalorder %s276_s10, %s276_s10 }
  0x1c   :  { %p283_p0 = por %p282_p13, %p281_p12 }
  0x1e   :  { %p284_p1 = pnand %p283_p0, %p277_p11 }
  0x20   :  { %287 = shalt.err (!%p284_p1)
}
  0x21   :  { %21 = dma.hbm_to_vmem [thread:$0]  %s446_s0, 64, %s19_s18, [#allocation3]  }
  0x22   :  { %s340_s12 = smov [#allocation7]   ;;  %s288_s16 = scalar_lea.hbm %s448_s2, 128 }
  0x23   :  { %s37_s13 = sshll.u32 %s340_s12, 4  ;;  %p289_p2 = scmp.ne.s32.totalorder %s448_s2, %s288_s16  ;;  %s38_s13 = int_to_ptr.vmem [resolvable:$true] %s37_s13 }
  0x24   :  { %p292_p3 = scmp.lt.u32.totalorder %s288_s16, %s448_s2 }
  0x26   :  { %p294_p4 = pnand %p292_p3, %p289_p2 }
  0x28   :  { %297 = shalt.err (!%p294_p4)
}
  0x29   :  { %s298_s22 = scalar_lea.vmem %s38_s13, 128  ;;  %p303_p6 = scmp.lt.s32.totalorder %s38_s13, %s38_s13 }
  0x2a   :  { %p299_p5 = scmp.ne.s32.totalorder %s38_s13, %s298_s22  ;;  %p304_p7 = scmp.lt.s32.totalorder %s298_s22, %s298_s22 }
  0x2c   :  { %p305_p8 = por %p304_p7, %p303_p6 }
  0x2e   :  { %p306_p9 = pnand %p305_p8, %p299_p5 }
  0x30   :  { %309 = shalt.err (!%p306_p9)
}
  0x31   :  { %s341_s0 = smov 16   ;;  %s342_s18 = smov 1  }
  0x32   :  { %43 = dma.hbm_to_vmem [thread:$0]  %s448_s2, 128, %s38_s13, [#allocation6], %s341_s0, %s341_s0, %s342_s18  }
  0x33   :  { %332 = dma.done.wait [#allocation3], 64  }
  0x34   :  { %333 = vsyncadd [#allocation3], 4294967232 }
  0x35   :  { %334 = dma.done.wait [#allocation6], 192  }
  0x36   :  { %335 = vsyncadd [#allocation6], 4294967104  ;;  %s343_s25 = smov [#allocation8]   ;;  %v55_v0 = vld [vmem:[#allocation2] sm:$0xf] }
  0x37   :  { %s407_s26 = sshll.u32 %s343_s25, 4  ;;  %v220_v1 = vld [vmem:[#allocation7] ss:$0 sm:$0xff]  ;;  %v221_v2 = vld [vmem:[#allocation7 + $0x1] ss:$0 sm:$0xff]  ;;  %s208_s26 = int_to_ptr.vmem [resolvable:$true] %s407_s26 }
  0x38   :  { %v112_v3 = vadd.f32 %v220_v1, %v55_v0  ;;  %v113_v4 = vadd.f32 %v221_v2, %v55_v0  ;;  %v222_v5 = vld [vmem:[#allocation7 + $0x2] ss:$0 sm:$0xff]  ;;  %v223_v6 = vld [vmem:[#allocation7 + $0x3] ss:$0 sm:$0xff]  ;;  %v224_v7 = vld [vmem:[#allocation7 + $0x4] ss:$0 sm:$0xff]  ;;  %p315_p11 = scmp.lt.s32.totalorder %s208_s26, %s208_s26 }
  0x39   :  { %v114_v8 = vadd.f32 %v222_v5, %v55_v0  ;;  %v115_v9 = vadd.f32 %v223_v6, %v55_v0  ;;  %v116_v10 = vadd.f32 %v224_v7, %v55_v0  ;;  %v225_v11 = vld [vmem:[#allocation7 + $0x5] ss:$0 sm:$0xff]  ;;  %v226_v12 = vld [vmem:[#allocation7 + $0x6] ss:$0 sm:$0xff]  ;;  %v227_v13 = vld [vmem:[#allocation7 + $0x7] ss:$0 sm:$0xff] }
  0x3a   :  { %120 = vst [vmem:[#allocation8] sm:$0xf] %v112_v3  ;;  %121 = vst [vmem:[#allocation8 + $0x4] sm:$0xf] %v113_v4  ;;  %v117_v14 = vadd.f32 %v225_v11, %v55_v0  ;;  %v118_v15 = vadd.f32 %v226_v12, %v55_v0  ;;  %v119_v16 = vadd.f32 %v227_v13, %v55_v0  ;;  %v128_v17 = vld [vmem:[#allocation5] sm:$0xf] }
  0x3b   :  { %v228_v18 = vld [vmem:[%s449_s3] ss:$0 sm:$0xff]  ;;  %v229_v19 = vld [vmem:[%s449_s3 + $0x1] ss:$0 sm:$0xff]  ;;  %122 = vst [vmem:[#allocation8 + $0x8] sm:$0xf] %v114_v8 }
  0x3c   :  { %123 = vst [vmem:[#allocation8 + $0xc] sm:$0xf] %v115_v9  ;;  %124 = vst [vmem:[#allocation8 + $0x10] sm:$0xf] %v116_v10  ;;  %v185_v20 = vadd.f32 %v228_v18, %v128_v17  ;;  %v186_v21 = vadd.f32 %v229_v19, %v128_v17  ;;  %v230_v22 = vld [vmem:[%s449_s3 + $0x2] ss:$0 sm:$0xff] }
  0x3d   :  { %v231_v23 = vld [vmem:[%s449_s3 + $0x3] ss:$0 sm:$0xff]  ;;  %v232_v24 = vld [vmem:[%s449_s3 + $0x4] ss:$0 sm:$0xff]  ;;  %125 = vst [vmem:[#allocation8 + $0x14] sm:$0xf] %v117_v14  ;;  %v187_v25 = vadd.f32 %v230_v22, %v128_v17 }
  0x3e   :  { %126 = vst [vmem:[#allocation8 + $0x18] sm:$0xf] %v118_v15  ;;  %127 = vst [vmem:[#allocation8 + $0x1c] sm:$0xf] %v119_v16  ;;  %v188_v26 = vadd.f32 %v231_v23, %v128_v17  ;;  %v189_v27 = vadd.f32 %v232_v24, %v128_v17  ;;  %v233_v28 = vld [vmem:[%s449_s3 + $0x5] ss:$0 sm:$0xff] }
  0x3f   :  { %v234_v29 = vld [vmem:[%s449_s3 + $0x6] ss:$0 sm:$0xff]  ;;  %v235_v30 = vld [vmem:[%s449_s3 + $0x7] ss:$0 sm:$0xff]  ;;  %194 = vst [vmem:[#allocation8 + $0x20] sm:$0xf] %v185_v20  ;;  %v190_v31 = vadd.f32 %v233_v28, %v128_v17 }
  0x40   :  { %195 = vst [vmem:[#allocation8 + $0x24] sm:$0xf] %v186_v21  ;;  %v191_v32 = vadd.f32 %v234_v29, %v128_v17  ;;  %v192_v33 = vadd.f32 %v235_v30, %v128_v17  ;;  %196 = vst [vmem:[#allocation8 + $0x28] sm:$0xf] %v187_v25  ;;  %s310_s15 = scalar_lea.vmem %s208_s26, 1024 }
  0x41   :  { %197 = vst [vmem:[#allocation8 + $0x2c] sm:$0xf] %v188_v26  ;;  %198 = vst [vmem:[#allocation8 + $0x30] sm:$0xf] %v189_v27  ;;  %p311_p10 = scmp.ne.s32.totalorder %s208_s26, %s310_s15  ;;  %p316_p12 = scmp.lt.s32.totalorder %s310_s15, %s310_s15 }
  0x42   :  { %199 = vst [vmem:[#allocation8 + $0x34] sm:$0xf] %v190_v31  ;;  %200 = vst [vmem:[#allocation8 + $0x38] sm:$0xf] %v191_v32 }
  0x43   :  { %201 = vst [vmem:[#allocation8 + $0x3c] sm:$0xf] %v192_v33  ;;  %p317_p13 = por %p316_p12, %p315_p11 }
  0x45   :  { %p318_p0 = pnand %p317_p13, %p311_p10 }
  0x47   :  { %321 = shalt.err (!%p318_p0)
}
  0x48   :  { %s322_s17 = scalar_lea.hbm %s450_s4, 1024 }
  0x49   :  { %p323_p1 = scmp.ne.s32.totalorder %s450_s4, %s322_s17  ;;  %p326_p2 = scmp.lt.u32.totalorder %s322_s17, %s450_s4 }
  0x4b   :  { %p328_p3 = pnand %p326_p2, %p323_p1 }
  0x4d   :  { %331 = shalt.err (!%p328_p3)
}
  0x4e   :  { %s344_s0 = smov 64   ;;  %s345_s18 = smov 4  }
  0x4f   :  { %213 = dma.vmem_to_hbm [thread:$0]  %s208_s26, 1024, %s450_s4, [#allocation4], %s344_s0, %s344_s0, %s345_s18  }
  0x50   :  { %336 = dma.done.wait [#allocation4], 1024  }
  0x51   :  { %337 = vsyncadd [#allocation4], 4294966272 }
  0x52   :  { %217 = vsyncpa [#allocation3], 1 }
  0x53   :  { %218 = vsyncpa [#allocation6], 1 }
  0x54   :  { %219 = vsyncpa [#allocation4], 1 }

</bundles_post_ra>
